<compile_context>
chip_gen: v7x
topology: tpu7x:2x2x1
jax: 0.10.0
libtpu: 0.0.40
codegen_flags: <defaults>
</compile_context>

<pallas_src>
import functools

import jax
import jax.numpy as jnp
from jax import lax
from jax.experimental import pallas as pl
from jax.experimental.pallas import tpu as pltpu


def _embed_kernel(ids_ref, pos_ref, tok_hbm, o_ref, tok_buf, sems, *, ts, nt, nbuf):
    """One grid step: gather `ts` token rows and add the position rows for tile (b, st).

    ids_ref : (B, S) int32 token ids in SMEM (scalar prefetch)
    pos_ref : (S, E) resident position table in VMEM (fetched once, constant block index)
    tok_hbm : (V, E) token embedding table, left in HBM (pl.ANY)
    o_ref   : (1, ts, E) output tile at (b, st)
    tok_buf : (nbuf, ts, E) multi-buffered VMEM gather scratch
    sems    : (nbuf,) DMA semaphores, one per buffer slot
    """
    b = pl.program_id(0)
    st = pl.program_id(1)
    slot = lax.rem(st, nbuf)

    def issue_gather(tile, slot_):
        base = tile * ts

        def body(r, carry):
            tid = ids_ref[b, base + r]
            pltpu.make_async_copy(
                tok_hbm.at[pl.ds(tid, 1)],        # (1, E) row of the token table
                tok_buf.at[slot_, pl.ds(r, 1)],   # (1, E) row of the scratch slab
                sems.at[slot_],
            ).start()
            return carry

        # Partial unroll: lets several SMEM id loads + DMA descriptor pushes co-issue.
        lax.fori_loop(0, ts, body, 0, unroll=min(8, ts))

    # Prime the gather pipeline at the start of every batch row.  Re-priming per batch
    # row keeps semaphore accounting balanced when the ("parallel") batch axis is
    # sharded across TensorCores (v7x megacore).
    n_prime = min(nbuf - 1, nt)

    @pl.when(st == 0)
    def _():
        for t in range(n_prime):              # static, <= nbuf-1 iterations
            issue_gather(t, t)

    # Prefetch (nbuf-1) tiles ahead within this batch row, into the slot freed at the
    # previous step, so its gather overlaps the wait/add/store of the current tile.
    @pl.when(st + (nbuf - 1) < nt)
    def _():
        issue_gather(st + (nbuf - 1), lax.rem(st + (nbuf - 1), nbuf))

    # Single aggregate wait for all `ts` row copies landing in the current slot.  The
    # wait descriptor is never started; it only has to match the total byte count
    # (ts * E * itemsize) signaled by the ts per-row starts.  (Assumes V >= ts, which
    # holds for any realistic vocab; the source slice is only used for its byte count.)
    pltpu.make_async_copy(
        tok_hbm.at[pl.ds(0, ts)],
        tok_buf.at[slot],
        sems.at[slot],
    ).wait()

    base = pl.multiple_of(st * ts, ts)
    o_ref[0] = tok_buf[slot] + pos_ref[pl.ds(base, ts), :]


def _pick_seq_tile(seq_len: int) -> int:
    """Largest lane/sublane-friendly tile that still leaves >= 2 tiles per row.

    Keeping nt >= 2 is what lets the gather pipeline overlap tile st+1 with tile st
    (fixes the nt == 1 degenerate case where the DMA queue drained every step).
    """
    for ts in (1024, 512, 256, 128):
        if seq_len % ts == 0 and seq_len // ts >= 2:
            return ts
    half = seq_len // 2
    if seq_len % 2 == 0 and half % 8 == 0 and half >= 8:
        return half
    return seq_len  # tiny / indivisible S: single full-sequence tile


def openai_gpt_embeddings(data, tokens_embed, positions_embed, pad_index=0,
                          num_gather_buffers=None):
    """JAX/Pallas equivalent of OpenAIGPTEmbeddings.forward.

    data:            [B, S] integer token ids (batch first)
    tokens_embed:    [V, E] token embedding table (vocab + special tokens)
    positions_embed: [P, E] positional embedding table (P >= S)
    Returns (hidden_states [B, S, E], mask [B, S] float32 or None).
    """
    B, S = data.shape
    V, E = tokens_embed.shape
    P, E2 = positions_embed.shape
    if E != E2:
        raise ValueError("token / position embedding sizes differ")
    if S > P:
        raise ValueError(f"sequence length {S} exceeds n_positions {P}")

    ts = _pick_seq_tile(S)
    nt = S // ts
    # 2 gather slots when there is little to overlap, 3 otherwise (deeper buffering
    # keeps more bytes in flight; cheap in VMEM at ts <= 1024).
    nbuf = num_gather_buffers if num_gather_buffers is not None else (2 if nt <= 2 else 3)
    nbuf = max(2, nbuf)

    # Clamp ids so a bad token id can never drive an out-of-range gather DMA.
    # NOTE: out-of-range tokens map to the last vocab row instead of erroring like
    # nn.Embedding would.
    ids = jnp.clip(data.astype(jnp.int32), 0, V - 1)
    # Only the first S rows of the position table are ever used; keep them resident
    # (constant block index -> fetched from HBM exactly once).
    pos_table = positions_embed[:S]

    # Explicit VMEM budget: resident positions (double-buffered by the pipeline),
    # nbuf gather slabs, double-buffered output tile, plus headroom.
    itemsize = jnp.dtype(tokens_embed.dtype).itemsize
    vmem_needed = (2 * S * E + (nbuf + 2) * ts * E) * itemsize
    vmem_limit = int(min(max(vmem_needed + (8 << 20), 32 << 20), 100 << 20))

    kernel = functools.partial(_embed_kernel, ts=ts, nt=nt, nbuf=nbuf)

    # TODO(synk): for very large B*S the whole (B, S) id array scalar-prefetched into
    # SMEM may exceed SMEM; switch to a per-row (1, S) SMEM-blocked input in that case.
    hidden = pl.pallas_call(
        kernel,
        out_shape=jax.ShapeDtypeStruct((B, S, E), tokens_embed.dtype),
        grid_spec=pltpu.PrefetchScalarGridSpec(
            num_scalar_prefetch=1,                # ids -> SMEM, read inside the kernel
            grid=(B, nt),
            in_specs=[
                # Resident position table: constant block index -> fetched once.
                pl.BlockSpec((S, E), lambda b, st, ids: (0, 0)),
                # Token table stays in HBM; rows gathered manually via DMA.
                pl.BlockSpec(memory_space=pl.ANY),
            ],
            out_specs=pl.BlockSpec((1, ts, E), lambda b, st, ids: (b, st, 0)),
            scratch_shapes=[
                pltpu.VMEM((nbuf, ts, E), tokens_embed.dtype),  # gather slots
                pltpu.SemaphoreType.DMA((nbuf,)),               # one DMA sem per slot
            ],
        ),
        compiler_params=pltpu.CompilerParams(
            # Batch rows are independent -> shard across TensorCores on v7x; sequence
            # tiles run in order within a row so the in-kernel prefetch chain is valid.
            dimension_semantics=("parallel", "arbitrary"),
            vmem_limit_bytes=vmem_limit,
        ),
    )(ids, pos_table, tokens_embed)

    mask = None
    if pad_index is not None:
        # Trivial elementwise glue; kept in plain JAX.
        mask = (data != pad_index).astype(jnp.float32)
    return hidden, mask


if __name__ == "__main__":
    # Small shapes consistent with the module (vocab/pos tables shrunk for the demo).
    B, S = 2, 8          # batch, sequence length
    V, E = 128, 128      # vocab size (+ n_special=0), embedding size
    P = 64               # n_positions
    PAD = 0              # pad_index
    INIT_RANGE = 0.02    # initializer_range

    key = jax.random.PRNGKey(0)
    k_tok, k_pos, k_ids = jax.random.split(key, 3)

    # Deterministic parameter init (normal(0, initializer_range), as in init_weights).
    tokens_embed = INIT_RANGE * jax.random.normal(k_tok, (V, E), dtype=jnp.float32)
    positions_embed = INIT_RANGE * jax.random.normal(k_pos, (P, E), dtype=jnp.float32)

    # Deterministic token ids; include a pad token so the mask is non-trivial.
    data = jax.random.randint(k_ids, (B, S), 0, V, dtype=jnp.int32)
    data = data.at[0, 0].set(PAD)

    hidden, mask = openai_gpt_embeddings(data, tokens_embed, positions_embed, pad_index=PAD)
    hidden = jax.block_until_ready(hidden)
    mask = jax.block_until_ready(mask)

    # Reference check against plain-JAX gather (same semantics as the PyTorch forward).
    ref = tokens_embed[data] + positions_embed[jnp.arange(S)][None, :, :]
    assert hidden.shape == (B, S, E) and hidden.dtype == jnp.float32
    assert mask.shape == (B, S) and mask.dtype == jnp.float32
    assert jnp.allclose(hidden, ref, atol=1e-6)
    assert jnp.allclose(mask, (data != PAD).astype(jnp.float32))

    print("KERNEL_OK")
</pallas_src>

<mosaic_0001>
module attributes {stable_mosaic.version = 11 : i64} {
  func.func @_embed_kernel(%arg0: i32, %arg1: i32, %arg2: memref<2x8xi32, #tpu.memory_space<smem>>, %arg3: memref<8x128xf32, #tpu.memory_space<vmem>>, %arg4: memref<128x128xf32, #tpu.memory_space<any>>, %arg5: memref<1x8x128xf32, #tpu.memory_space<vmem>>, %arg6: memref<2x8x128xf32, #tpu.memory_space<vmem>>, %arg7: memref<2x!tpu.dma_semaphore, #tpu.memory_space<semaphore_mem>>) attributes {dimension_semantics = [#tpu.dimension_semantics<parallel>, #tpu.dimension_semantics<arbitrary>], iteration_bounds = array<i64: 2, 1>, scalar_prefetch = 1 : i64, scratch_operands = 2 : i64, tpu.core_type = #tpu.core_type<tc>, window_params = [{pipeline_mode = #tpu.pipeline_mode<synchronous>, transform_indices = @transform_0, window_bounds = array<i64: 8, 128>}, {}, {transform_indices = @transform_2, window_bounds = array<i64: 1, 8, 128>}]} {
    %c2_i32 = arith.constant 2 : i32
    %0 = arith.remsi %arg1, %c2_i32 : i32
    %c0_i32 = arith.constant 0 : i32
    %1 = arith.cmpi eq, %arg1, %c0_i32 : i32
    %2 = arith.extui %1 : i1 to i32
    %c0_i32_0 = arith.constant 0 : i32
    %3 = arith.cmpi ne, %2, %c0_i32_0 : i32
    scf.if %3 {
      %c0_i32_12 = arith.constant 0 : i32
      %c0_i32_13 = arith.constant 0 : i32
      %24 = arith.addi %c0_i32_13, %c0_i32_12 : i32
      %25 = arith.index_cast %arg0 : i32 to index
      %26 = arith.index_cast %24 : i32 to index
      %27 = memref.load %arg2[%25, %26] : memref<2x8xi32, #tpu.memory_space<smem>>
      %c0_i32_14 = arith.constant 0 : i32
      %c0_i32_15 = arith.constant 0 : i32
      %c0_i32_16 = arith.constant 0 : i32
      %28 = tpu.memref_slice %arg4[%27, %c0_i32_16] : memref<128x128xf32, #tpu.memory_space<any>> -> memref<1x128xf32, #tpu.memory_space<any>>
      %c0_i32_17 = arith.constant 0 : i32
      %29 = tpu.memref_slice %arg6[%c0_i32_14, %c0_i32_12, %c0_i32_17] : memref<2x8x128xf32, #tpu.memory_space<vmem>> -> memref<1x1x128xf32, #tpu.memory_space<vmem>>
      %30 = tpu.memref_squeeze %29 : memref<1x1x128xf32, #tpu.memory_space<vmem>> -> memref<1x128xf32, #tpu.memory_space<vmem>>
      %31 = tpu.memref_slice %arg7[%c0_i32_15] : memref<2x!tpu.dma_semaphore, #tpu.memory_space<semaphore_mem>> -> memref<1x!tpu.dma_semaphore, #tpu.memory_space<semaphore_mem>>
      %32 = tpu.memref_squeeze %31 : memref<1x!tpu.dma_semaphore, #tpu.memory_space<semaphore_mem>> -> memref<!tpu.dma_semaphore, #tpu.memory_space<semaphore_mem>>
      tpu.enqueue_dma source(%28 : memref<1x128xf32, #tpu.memory_space<any>>) target(%30 : memref<1x128xf32, #tpu.memory_space<vmem>>) target_semaphore(%32 : memref<!tpu.dma_semaphore, #tpu.memory_space<semaphore_mem>>)
      %c1_i32_18 = arith.constant 1 : i32
      %c0_i32_19 = arith.constant 0 : i32
      %33 = arith.addi %c0_i32_19, %c1_i32_18 : i32
      %34 = arith.index_cast %arg0 : i32 to index
      %35 = arith.index_cast %33 : i32 to index
      %36 = memref.load %arg2[%34, %35] : memref<2x8xi32, #tpu.memory_space<smem>>
      %c0_i32_20 = arith.constant 0 : i32
      %c0_i32_21 = arith.constant 0 : i32
      %c0_i32_22 = arith.constant 0 : i32
      %37 = tpu.memref_slice %arg4[%36, %c0_i32_22] : memref<128x128xf32, #tpu.memory_space<any>> -> memref<1x128xf32, #tpu.memory_space<any>>
      %c0_i32_23 = arith.constant 0 : i32
      %38 = tpu.memref_slice %arg6[%c0_i32_20, %c1_i32_18, %c0_i32_23] : memref<2x8x128xf32, #tpu.memory_space<vmem>> -> memref<1x1x128xf32, #tpu.memory_space<vmem>>
      %39 = tpu.memref_squeeze %38 : memref<1x1x128xf32, #tpu.memory_space<vmem>> -> memref<1x128xf32, #tpu.memory_space<vmem>>
      %40 = tpu.memref_slice %arg7[%c0_i32_21] : memref<2x!tpu.dma_semaphore, #tpu.memory_space<semaphore_mem>> -> memref<1x!tpu.dma_semaphore, #tpu.memory_space<semaphore_mem>>
      %41 = tpu.memref_squeeze %40 : memref<1x!tpu.dma_semaphore, #tpu.memory_space<semaphore_mem>> -> memref<!tpu.dma_semaphore, #tpu.memory_space<semaphore_mem>>
      tpu.enqueue_dma source(%37 : memref<1x128xf32, #tpu.memory_space<any>>) target(%39 : memref<1x128xf32, #tpu.memory_space<vmem>>) target_semaphore(%41 : memref<!tpu.dma_semaphore, #tpu.memory_space<semaphore_mem>>)
      %c2_i32_24 = arith.constant 2 : i32
      %c0_i32_25 = arith.constant 0 : i32
      %42 = arith.addi %c0_i32_25, %c2_i32_24 : i32
      %43 = arith.index_cast %arg0 : i32 to index
      %44 = arith.index_cast %42 : i32 to index
      %45 = memref.load %arg2[%43, %44] : memref<2x8xi32, #tpu.memory_space<smem>>
      %c0_i32_26 = arith.constant 0 : i32
      %c0_i32_27 = arith.constant 0 : i32
      %c0_i32_28 = arith.constant 0 : i32
      %46 = tpu.memref_slice %arg4[%45, %c0_i32_28] : memref<128x128xf32, #tpu.memory_space<any>> -> memref<1x128xf32, #tpu.memory_space<any>>
      %c0_i32_29 = arith.constant 0 : i32
      %47 = tpu.memref_slice %arg6[%c0_i32_26, %c2_i32_24, %c0_i32_29] : memref<2x8x128xf32, #tpu.memory_space<vmem>> -> memref<1x1x128xf32, #tpu.memory_space<vmem>>
      %48 = tpu.memref_squeeze %47 : memref<1x1x128xf32, #tpu.memory_space<vmem>> -> memref<1x128xf32, #tpu.memory_space<vmem>>
      %49 = tpu.memref_slice %arg7[%c0_i32_27] : memref<2x!tpu.dma_semaphore, #tpu.memory_space<semaphore_mem>> -> memref<1x!tpu.dma_semaphore, #tpu.memory_space<semaphore_mem>>
      %50 = tpu.memref_squeeze %49 : memref<1x!tpu.dma_semaphore, #tpu.memory_space<semaphore_mem>> -> memref<!tpu.dma_semaphore, #tpu.memory_space<semaphore_mem>>
      tpu.enqueue_dma source(%46 : memref<1x128xf32, #tpu.memory_space<any>>) target(%48 : memref<1x128xf32, #tpu.memory_space<vmem>>) target_semaphore(%50 : memref<!tpu.dma_semaphore, #tpu.memory_space<semaphore_mem>>)
      %c3_i32 = arith.constant 3 : i32
      %c0_i32_30 = arith.constant 0 : i32
      %51 = arith.addi %c0_i32_30, %c3_i32 : i32
      %52 = arith.index_cast %arg0 : i32 to index
      %53 = arith.index_cast %51 : i32 to index
      %54 = memref.load %arg2[%52, %53] : memref<2x8xi32, #tpu.memory_space<smem>>
      %c0_i32_31 = arith.constant 0 : i32
      %c0_i32_32 = arith.constant 0 : i32
      %c0_i32_33 = arith.constant 0 : i32
      %55 = tpu.memref_slice %arg4[%54, %c0_i32_33] : memref<128x128xf32, #tpu.memory_space<any>> -> memref<1x128xf32, #tpu.memory_space<any>>
      %c0_i32_34 = arith.constant 0 : i32
      %56 = tpu.memref_slice %arg6[%c0_i32_31, %c3_i32, %c0_i32_34] : memref<2x8x128xf32, #tpu.memory_space<vmem>> -> memref<1x1x128xf32, #tpu.memory_space<vmem>>
      %57 = tpu.memref_squeeze %56 : memref<1x1x128xf32, #tpu.memory_space<vmem>> -> memref<1x128xf32, #tpu.memory_space<vmem>>
      %58 = tpu.memref_slice %arg7[%c0_i32_32] : memref<2x!tpu.dma_semaphore, #tpu.memory_space<semaphore_mem>> -> memref<1x!tpu.dma_semaphore, #tpu.memory_space<semaphore_mem>>
      %59 = tpu.memref_squeeze %58 : memref<1x!tpu.dma_semaphore, #tpu.memory_space<semaphore_mem>> -> memref<!tpu.dma_semaphore, #tpu.memory_space<semaphore_mem>>
      tpu.enqueue_dma source(%55 : memref<1x128xf32, #tpu.memory_space<any>>) target(%57 : memref<1x128xf32, #tpu.memory_space<vmem>>) target_semaphore(%59 : memref<!tpu.dma_semaphore, #tpu.memory_space<semaphore_mem>>)
      %c4_i32 = arith.constant 4 : i32
      %c0_i32_35 = arith.constant 0 : i32
      %60 = arith.addi %c0_i32_35, %c4_i32 : i32
      %61 = arith.index_cast %arg0 : i32 to index
      %62 = arith.index_cast %60 : i32 to index
      %63 = memref.load %arg2[%61, %62] : memref<2x8xi32, #tpu.memory_space<smem>>
      %c0_i32_36 = arith.constant 0 : i32
      %c0_i32_37 = arith.constant 0 : i32
      %c0_i32_38 = arith.constant 0 : i32
      %64 = tpu.memref_slice %arg4[%63, %c0_i32_38] : memref<128x128xf32, #tpu.memory_space<any>> -> memref<1x128xf32, #tpu.memory_space<any>>
      %c0_i32_39 = arith.constant 0 : i32
      %65 = tpu.memref_slice %arg6[%c0_i32_36, %c4_i32, %c0_i32_39] : memref<2x8x128xf32, #tpu.memory_space<vmem>> -> memref<1x1x128xf32, #tpu.memory_space<vmem>>
      %66 = tpu.memref_squeeze %65 : memref<1x1x128xf32, #tpu.memory_space<vmem>> -> memref<1x128xf32, #tpu.memory_space<vmem>>
      %67 = tpu.memref_slice %arg7[%c0_i32_37] : memref<2x!tpu.dma_semaphore, #tpu.memory_space<semaphore_mem>> -> memref<1x!tpu.dma_semaphore, #tpu.memory_space<semaphore_mem>>
      %68 = tpu.memref_squeeze %67 : memref<1x!tpu.dma_semaphore, #tpu.memory_space<semaphore_mem>> -> memref<!tpu.dma_semaphore, #tpu.memory_space<semaphore_mem>>
      tpu.enqueue_dma source(%64 : memref<1x128xf32, #tpu.memory_space<any>>) target(%66 : memref<1x128xf32, #tpu.memory_space<vmem>>) target_semaphore(%68 : memref<!tpu.dma_semaphore, #tpu.memory_space<semaphore_mem>>)
      %c5_i32 = arith.constant 5 : i32
      %c0_i32_40 = arith.constant 0 : i32
      %69 = arith.addi %c0_i32_40, %c5_i32 : i32
      %70 = arith.index_cast %arg0 : i32 to index
      %71 = arith.index_cast %69 : i32 to index
      %72 = memref.load %arg2[%70, %71] : memref<2x8xi32, #tpu.memory_space<smem>>
      %c0_i32_41 = arith.constant 0 : i32
      %c0_i32_42 = arith.constant 0 : i32
      %c0_i32_43 = arith.constant 0 : i32
      %73 = tpu.memref_slice %arg4[%72, %c0_i32_43] : memref<128x128xf32, #tpu.memory_space<any>> -> memref<1x128xf32, #tpu.memory_space<any>>
      %c0_i32_44 = arith.constant 0 : i32
      %74 = tpu.memref_slice %arg6[%c0_i32_41, %c5_i32, %c0_i32_44] : memref<2x8x128xf32, #tpu.memory_space<vmem>> -> memref<1x1x128xf32, #tpu.memory_space<vmem>>
      %75 = tpu.memref_squeeze %74 : memref<1x1x128xf32, #tpu.memory_space<vmem>> -> memref<1x128xf32, #tpu.memory_space<vmem>>
      %76 = tpu.memref_slice %arg7[%c0_i32_42] : memref<2x!tpu.dma_semaphore, #tpu.memory_space<semaphore_mem>> -> memref<1x!tpu.dma_semaphore, #tpu.memory_space<semaphore_mem>>
      %77 = tpu.memref_squeeze %76 : memref<1x!tpu.dma_semaphore, #tpu.memory_space<semaphore_mem>> -> memref<!tpu.dma_semaphore, #tpu.memory_space<semaphore_mem>>
      tpu.enqueue_dma source(%73 : memref<1x128xf32, #tpu.memory_space<any>>) target(%75 : memref<1x128xf32, #tpu.memory_space<vmem>>) target_semaphore(%77 : memref<!tpu.dma_semaphore, #tpu.memory_space<semaphore_mem>>)
      %c6_i32 = arith.constant 6 : i32
      %c0_i32_45 = arith.constant 0 : i32
      %78 = arith.addi %c0_i32_45, %c6_i32 : i32
      %79 = arith.index_cast %arg0 : i32 to index
      %80 = arith.index_cast %78 : i32 to index
      %81 = memref.load %arg2[%79, %80] : memref<2x8xi32, #tpu.memory_space<smem>>
      %c0_i32_46 = arith.constant 0 : i32
      %c0_i32_47 = arith.constant 0 : i32
      %c0_i32_48 = arith.constant 0 : i32
      %82 = tpu.memref_slice %arg4[%81, %c0_i32_48] : memref<128x128xf32, #tpu.memory_space<any>> -> memref<1x128xf32, #tpu.memory_space<any>>
      %c0_i32_49 = arith.constant 0 : i32
      %83 = tpu.memref_slice %arg6[%c0_i32_46, %c6_i32, %c0_i32_49] : memref<2x8x128xf32, #tpu.memory_space<vmem>> -> memref<1x1x128xf32, #tpu.memory_space<vmem>>
      %84 = tpu.memref_squeeze %83 : memref<1x1x128xf32, #tpu.memory_space<vmem>> -> memref<1x128xf32, #tpu.memory_space<vmem>>
      %85 = tpu.memref_slice %arg7[%c0_i32_47] : memref<2x!tpu.dma_semaphore, #tpu.memory_space<semaphore_mem>> -> memref<1x!tpu.dma_semaphore, #tpu.memory_space<semaphore_mem>>
      %86 = tpu.memref_squeeze %85 : memref<1x!tpu.dma_semaphore, #tpu.memory_space<semaphore_mem>> -> memref<!tpu.dma_semaphore, #tpu.memory_space<semaphore_mem>>
      tpu.enqueue_dma source(%82 : memref<1x128xf32, #tpu.memory_space<any>>) target(%84 : memref<1x128xf32, #tpu.memory_space<vmem>>) target_semaphore(%86 : memref<!tpu.dma_semaphore, #tpu.memory_space<semaphore_mem>>)
      %c7_i32 = arith.constant 7 : i32
      %c0_i32_50 = arith.constant 0 : i32
      %87 = arith.addi %c0_i32_50, %c7_i32 : i32
      %88 = arith.index_cast %arg0 : i32 to index
      %89 = arith.index_cast %87 : i32 to index
      %90 = memref.load %arg2[%88, %89] : memref<2x8xi32, #tpu.memory_space<smem>>
      %c0_i32_51 = arith.constant 0 : i32
      %c0_i32_52 = arith.constant 0 : i32
      %c0_i32_53 = arith.constant 0 : i32
      %91 = tpu.memref_slice %arg4[%90, %c0_i32_53] : memref<128x128xf32, #tpu.memory_space<any>> -> memref<1x128xf32, #tpu.memory_space<any>>
      %c0_i32_54 = arith.constant 0 : i32
      %92 = tpu.memref_slice %arg6[%c0_i32_51, %c7_i32, %c0_i32_54] : memref<2x8x128xf32, #tpu.memory_space<vmem>> -> memref<1x1x128xf32, #tpu.memory_space<vmem>>
      %93 = tpu.memref_squeeze %92 : memref<1x1x128xf32, #tpu.memory_space<vmem>> -> memref<1x128xf32, #tpu.memory_space<vmem>>
      %94 = tpu.memref_slice %arg7[%c0_i32_52] : memref<2x!tpu.dma_semaphore, #tpu.memory_space<semaphore_mem>> -> memref<1x!tpu.dma_semaphore, #tpu.memory_space<semaphore_mem>>
      %95 = tpu.memref_squeeze %94 : memref<1x!tpu.dma_semaphore, #tpu.memory_space<semaphore_mem>> -> memref<!tpu.dma_semaphore, #tpu.memory_space<semaphore_mem>>
      tpu.enqueue_dma source(%91 : memref<1x128xf32, #tpu.memory_space<any>>) target(%93 : memref<1x128xf32, #tpu.memory_space<vmem>>) target_semaphore(%95 : memref<!tpu.dma_semaphore, #tpu.memory_space<semaphore_mem>>)
      %c8_i32_55 = arith.constant 8 : i32
    } else {
    }
    %c1_i32 = arith.constant 1 : i32
    %4 = arith.addi %arg1, %c1_i32 : i32
    %c1_i32_1 = arith.constant 1 : i32
    %5 = arith.cmpi slt, %4, %c1_i32_1 : i32
    %6 = arith.extui %5 : i1 to i32
    %c0_i32_2 = arith.constant 0 : i32
    %7 = arith.cmpi ne, %6, %c0_i32_2 : i32
    scf.if %7 {
      %c1_i32_12 = arith.constant 1 : i32
      %24 = arith.addi %arg1, %c1_i32_12 : i32
      %c1_i32_13 = arith.constant 1 : i32
      %25 = arith.addi %arg1, %c1_i32_13 : i32
      %c2_i32_14 = arith.constant 2 : i32
      %26 = arith.remsi %25, %c2_i32_14 : i32
      %c8_i32_15 = arith.constant 8 : i32
      %27 = arith.muli %24, %c8_i32_15 : i32
      %c0_i32_16 = arith.constant 0 : i32
      %28 = arith.addi %27, %c0_i32_16 : i32
      %29 = arith.index_cast %arg0 : i32 to index
      %30 = arith.index_cast %28 : i32 to index
      %31 = memref.load %arg2[%29, %30] : memref<2x8xi32, #tpu.memory_space<smem>>
      %c0_i32_17 = arith.constant 0 : i32
      %32 = tpu.memref_slice %arg4[%31, %c0_i32_17] : memref<128x128xf32, #tpu.memory_space<any>> -> memref<1x128xf32, #tpu.memory_space<any>>
      %c0_i32_18 = arith.constant 0 : i32
      %33 = tpu.memref_slice %arg6[%26, %c0_i32_16, %c0_i32_18] : memref<2x8x128xf32, #tpu.memory_space<vmem>> -> memref<1x1x128xf32, #tpu.memory_space<vmem>>
      %34 = tpu.memref_squeeze %33 : memref<1x1x128xf32, #tpu.memory_space<vmem>> -> memref<1x128xf32, #tpu.memory_space<vmem>>
      %35 = tpu.memref_slice %arg7[%26] : memref<2x!tpu.dma_semaphore, #tpu.memory_space<semaphore_mem>> -> memref<1x!tpu.dma_semaphore, #tpu.memory_space<semaphore_mem>>
      %36 = tpu.memref_squeeze %35 : memref<1x!tpu.dma_semaphore, #tpu.memory_space<semaphore_mem>> -> memref<!tpu.dma_semaphore, #tpu.memory_space<semaphore_mem>>
      tpu.enqueue_dma source(%32 : memref<1x128xf32, #tpu.memory_space<any>>) target(%34 : memref<1x128xf32, #tpu.memory_space<vmem>>) target_semaphore(%36 : memref<!tpu.dma_semaphore, #tpu.memory_space<semaphore_mem>>)
      %c1_i32_19 = arith.constant 1 : i32
      %37 = arith.addi %27, %c1_i32_19 : i32
      %38 = arith.index_cast %arg0 : i32 to index
      %39 = arith.index_cast %37 : i32 to index
      %40 = memref.load %arg2[%38, %39] : memref<2x8xi32, #tpu.memory_space<smem>>
      %c0_i32_20 = arith.constant 0 : i32
      %41 = tpu.memref_slice %arg4[%40, %c0_i32_20] : memref<128x128xf32, #tpu.memory_space<any>> -> memref<1x128xf32, #tpu.memory_space<any>>
      %c0_i32_21 = arith.constant 0 : i32
      %42 = tpu.memref_slice %arg6[%26, %c1_i32_19, %c0_i32_21] : memref<2x8x128xf32, #tpu.memory_space<vmem>> -> memref<1x1x128xf32, #tpu.memory_space<vmem>>
      %43 = tpu.memref_squeeze %42 : memref<1x1x128xf32, #tpu.memory_space<vmem>> -> memref<1x128xf32, #tpu.memory_space<vmem>>
      %44 = tpu.memref_slice %arg7[%26] : memref<2x!tpu.dma_semaphore, #tpu.memory_space<semaphore_mem>> -> memref<1x!tpu.dma_semaphore, #tpu.memory_space<semaphore_mem>>
      %45 = tpu.memref_squeeze %44 : memref<1x!tpu.dma_semaphore, #tpu.memory_space<semaphore_mem>> -> memref<!tpu.dma_semaphore, #tpu.memory_space<semaphore_mem>>
      tpu.enqueue_dma source(%41 : memref<1x128xf32, #tpu.memory_space<any>>) target(%43 : memref<1x128xf32, #tpu.memory_space<vmem>>) target_semaphore(%45 : memref<!tpu.dma_semaphore, #tpu.memory_space<semaphore_mem>>)
      %c2_i32_22 = arith.constant 2 : i32
      %46 = arith.addi %27, %c2_i32_22 : i32
      %47 = arith.index_cast %arg0 : i32 to index
      %48 = arith.index_cast %46 : i32 to index
      %49 = memref.load %arg2[%47, %48] : memref<2x8xi32, #tpu.memory_space<smem>>
      %c0_i32_23 = arith.constant 0 : i32
      %50 = tpu.memref_slice %arg4[%49, %c0_i32_23] : memref<128x128xf32, #tpu.memory_space<any>> -> memref<1x128xf32, #tpu.memory_space<any>>
      %c0_i32_24 = arith.constant 0 : i32
      %51 = tpu.memref_slice %arg6[%26, %c2_i32_22, %c0_i32_24] : memref<2x8x128xf32, #tpu.memory_space<vmem>> -> memref<1x1x128xf32, #tpu.memory_space<vmem>>
      %52 = tpu.memref_squeeze %51 : memref<1x1x128xf32, #tpu.memory_space<vmem>> -> memref<1x128xf32, #tpu.memory_space<vmem>>
      %53 = tpu.memref_slice %arg7[%26] : memref<2x!tpu.dma_semaphore, #tpu.memory_space<semaphore_mem>> -> memref<1x!tpu.dma_semaphore, #tpu.memory_space<semaphore_mem>>
      %54 = tpu.memref_squeeze %53 : memref<1x!tpu.dma_semaphore, #tpu.memory_space<semaphore_mem>> -> memref<!tpu.dma_semaphore, #tpu.memory_space<semaphore_mem>>
      tpu.enqueue_dma source(%50 : memref<1x128xf32, #tpu.memory_space<any>>) target(%52 : memref<1x128xf32, #tpu.memory_space<vmem>>) target_semaphore(%54 : memref<!tpu.dma_semaphore, #tpu.memory_space<semaphore_mem>>)
      %c3_i32 = arith.constant 3 : i32
      %55 = arith.addi %27, %c3_i32 : i32
      %56 = arith.index_cast %arg0 : i32 to index
      %57 = arith.index_cast %55 : i32 to index
      %58 = memref.load %arg2[%56, %57] : memref<2x8xi32, #tpu.memory_space<smem>>
      %c0_i32_25 = arith.constant 0 : i32
      %59 = tpu.memref_slice %arg4[%58, %c0_i32_25] : memref<128x128xf32, #tpu.memory_space<any>> -> memref<1x128xf32, #tpu.memory_space<any>>
      %c0_i32_26 = arith.constant 0 : i32
      %60 = tpu.memref_slice %arg6[%26, %c3_i32, %c0_i32_26] : memref<2x8x128xf32, #tpu.memory_space<vmem>> -> memref<1x1x128xf32, #tpu.memory_space<vmem>>
      %61 = tpu.memref_squeeze %60 : memref<1x1x128xf32, #tpu.memory_space<vmem>> -> memref<1x128xf32, #tpu.memory_space<vmem>>
      %62 = tpu.memref_slice %arg7[%26] : memref<2x!tpu.dma_semaphore, #tpu.memory_space<semaphore_mem>> -> memref<1x!tpu.dma_semaphore, #tpu.memory_space<semaphore_mem>>
      %63 = tpu.memref_squeeze %62 : memref<1x!tpu.dma_semaphore, #tpu.memory_space<semaphore_mem>> -> memref<!tpu.dma_semaphore, #tpu.memory_space<semaphore_mem>>
      tpu.enqueue_dma source(%59 : memref<1x128xf32, #tpu.memory_space<any>>) target(%61 : memref<1x128xf32, #tpu.memory_space<vmem>>) target_semaphore(%63 : memref<!tpu.dma_semaphore, #tpu.memory_space<semaphore_mem>>)
      %c4_i32 = arith.constant 4 : i32
      %64 = arith.addi %27, %c4_i32 : i32
      %65 = arith.index_cast %arg0 : i32 to index
      %66 = arith.index_cast %64 : i32 to index
      %67 = memref.load %arg2[%65, %66] : memref<2x8xi32, #tpu.memory_space<smem>>
      %c0_i32_27 = arith.constant 0 : i32
      %68 = tpu.memref_slice %arg4[%67, %c0_i32_27] : memref<128x128xf32, #tpu.memory_space<any>> -> memref<1x128xf32, #tpu.memory_space<any>>
      %c0_i32_28 = arith.constant 0 : i32
      %69 = tpu.memref_slice %arg6[%26, %c4_i32, %c0_i32_28] : memref<2x8x128xf32, #tpu.memory_space<vmem>> -> memref<1x1x128xf32, #tpu.memory_space<vmem>>
      %70 = tpu.memref_squeeze %69 : memref<1x1x128xf32, #tpu.memory_space<vmem>> -> memref<1x128xf32, #tpu.memory_space<vmem>>
      %71 = tpu.memref_slice %arg7[%26] : memref<2x!tpu.dma_semaphore, #tpu.memory_space<semaphore_mem>> -> memref<1x!tpu.dma_semaphore, #tpu.memory_space<semaphore_mem>>
      %72 = tpu.memref_squeeze %71 : memref<1x!tpu.dma_semaphore, #tpu.memory_space<semaphore_mem>> -> memref<!tpu.dma_semaphore, #tpu.memory_space<semaphore_mem>>
      tpu.enqueue_dma source(%68 : memref<1x128xf32, #tpu.memory_space<any>>) target(%70 : memref<1x128xf32, #tpu.memory_space<vmem>>) target_semaphore(%72 : memref<!tpu.dma_semaphore, #tpu.memory_space<semaphore_mem>>)
      %c5_i32 = arith.constant 5 : i32
      %73 = arith.addi %27, %c5_i32 : i32
      %74 = arith.index_cast %arg0 : i32 to index
      %75 = arith.index_cast %73 : i32 to index
      %76 = memref.load %arg2[%74, %75] : memref<2x8xi32, #tpu.memory_space<smem>>
      %c0_i32_29 = arith.constant 0 : i32
      %77 = tpu.memref_slice %arg4[%76, %c0_i32_29] : memref<128x128xf32, #tpu.memory_space<any>> -> memref<1x128xf32, #tpu.memory_space<any>>
      %c0_i32_30 = arith.constant 0 : i32
      %78 = tpu.memref_slice %arg6[%26, %c5_i32, %c0_i32_30] : memref<2x8x128xf32, #tpu.memory_space<vmem>> -> memref<1x1x128xf32, #tpu.memory_space<vmem>>
      %79 = tpu.memref_squeeze %78 : memref<1x1x128xf32, #tpu.memory_space<vmem>> -> memref<1x128xf32, #tpu.memory_space<vmem>>
      %80 = tpu.memref_slice %arg7[%26] : memref<2x!tpu.dma_semaphore, #tpu.memory_space<semaphore_mem>> -> memref<1x!tpu.dma_semaphore, #tpu.memory_space<semaphore_mem>>
      %81 = tpu.memref_squeeze %80 : memref<1x!tpu.dma_semaphore, #tpu.memory_space<semaphore_mem>> -> memref<!tpu.dma_semaphore, #tpu.memory_space<semaphore_mem>>
      tpu.enqueue_dma source(%77 : memref<1x128xf32, #tpu.memory_space<any>>) target(%79 : memref<1x128xf32, #tpu.memory_space<vmem>>) target_semaphore(%81 : memref<!tpu.dma_semaphore, #tpu.memory_space<semaphore_mem>>)
      %c6_i32 = arith.constant 6 : i32
      %82 = arith.addi %27, %c6_i32 : i32
      %83 = arith.index_cast %arg0 : i32 to index
      %84 = arith.index_cast %82 : i32 to index
      %85 = memref.load %arg2[%83, %84] : memref<2x8xi32, #tpu.memory_space<smem>>
      %c0_i32_31 = arith.constant 0 : i32
      %86 = tpu.memref_slice %arg4[%85, %c0_i32_31] : memref<128x128xf32, #tpu.memory_space<any>> -> memref<1x128xf32, #tpu.memory_space<any>>
      %c0_i32_32 = arith.constant 0 : i32
      %87 = tpu.memref_slice %arg6[%26, %c6_i32, %c0_i32_32] : memref<2x8x128xf32, #tpu.memory_space<vmem>> -> memref<1x1x128xf32, #tpu.memory_space<vmem>>
      %88 = tpu.memref_squeeze %87 : memref<1x1x128xf32, #tpu.memory_space<vmem>> -> memref<1x128xf32, #tpu.memory_space<vmem>>
      %89 = tpu.memref_slice %arg7[%26] : memref<2x!tpu.dma_semaphore, #tpu.memory_space<semaphore_mem>> -> memref<1x!tpu.dma_semaphore, #tpu.memory_space<semaphore_mem>>
      %90 = tpu.memref_squeeze %89 : memref<1x!tpu.dma_semaphore, #tpu.memory_space<semaphore_mem>> -> memref<!tpu.dma_semaphore, #tpu.memory_space<semaphore_mem>>
      tpu.enqueue_dma source(%86 : memref<1x128xf32, #tpu.memory_space<any>>) target(%88 : memref<1x128xf32, #tpu.memory_space<vmem>>) target_semaphore(%90 : memref<!tpu.dma_semaphore, #tpu.memory_space<semaphore_mem>>)
      %c7_i32 = arith.constant 7 : i32
      %91 = arith.addi %27, %c7_i32 : i32
      %92 = arith.index_cast %arg0 : i32 to index
      %93 = arith.index_cast %91 : i32 to index
      %94 = memref.load %arg2[%92, %93] : memref<2x8xi32, #tpu.memory_space<smem>>
      %c0_i32_33 = arith.constant 0 : i32
      %95 = tpu.memref_slice %arg4[%94, %c0_i32_33] : memref<128x128xf32, #tpu.memory_space<any>> -> memref<1x128xf32, #tpu.memory_space<any>>
      %c0_i32_34 = arith.constant 0 : i32
      %96 = tpu.memref_slice %arg6[%26, %c7_i32, %c0_i32_34] : memref<2x8x128xf32, #tpu.memory_space<vmem>> -> memref<1x1x128xf32, #tpu.memory_space<vmem>>
      %97 = tpu.memref_squeeze %96 : memref<1x1x128xf32, #tpu.memory_space<vmem>> -> memref<1x128xf32, #tpu.memory_space<vmem>>
      %98 = tpu.memref_slice %arg7[%26] : memref<2x!tpu.dma_semaphore, #tpu.memory_space<semaphore_mem>> -> memref<1x!tpu.dma_semaphore, #tpu.memory_space<semaphore_mem>>
      %99 = tpu.memref_squeeze %98 : memref<1x!tpu.dma_semaphore, #tpu.memory_space<semaphore_mem>> -> memref<!tpu.dma_semaphore, #tpu.memory_space<semaphore_mem>>
      tpu.enqueue_dma source(%95 : memref<1x128xf32, #tpu.memory_space<any>>) target(%97 : memref<1x128xf32, #tpu.memory_space<vmem>>) target_semaphore(%99 : memref<!tpu.dma_semaphore, #tpu.memory_space<semaphore_mem>>)
      %c8_i32_35 = arith.constant 8 : i32
    } else {
    }
    %c0_i32_3 = arith.constant 0 : i32
    %c0_i32_4 = arith.constant 0 : i32
    %8 = tpu.memref_slice %arg4[%c0_i32_3, %c0_i32_4] : memref<128x128xf32, #tpu.memory_space<any>> -> memref<8x128xf32, #tpu.memory_space<any>>
    %c0_i32_5 = arith.constant 0 : i32
    %c0_i32_6 = arith.constant 0 : i32
    %9 = tpu.memref_slice %arg6[%0, %c0_i32_5, %c0_i32_6] : memref<2x8x128xf32, #tpu.memory_space<vmem>> -> memref<1x8x128xf32, #tpu.memory_space<vmem>>
    %10 = tpu.memref_squeeze %9 : memref<1x8x128xf32, #tpu.memory_space<vmem>> -> memref<8x128xf32, #tpu.memory_space<vmem>>
    %11 = tpu.memref_slice %arg7[%0] : memref<2x!tpu.dma_semaphore, #tpu.memory_space<semaphore_mem>> -> memref<1x!tpu.dma_semaphore, #tpu.memory_space<semaphore_mem>>
    %12 = tpu.memref_squeeze %11 : memref<1x!tpu.dma_semaphore, #tpu.memory_space<semaphore_mem>> -> memref<!tpu.dma_semaphore, #tpu.memory_space<semaphore_mem>>
    tpu.wait_dma2 semaphore(%12 : memref<!tpu.dma_semaphore, #tpu.memory_space<semaphore_mem>>) src(%8 : memref<8x128xf32, #tpu.memory_space<any>>) dst(%10 : memref<8x128xf32, #tpu.memory_space<vmem>>)
    %c8_i32 = arith.constant 8 : i32
    %13 = arith.muli %arg1, %c8_i32 : i32
    %14 = tpu.assume_multiple %13, 8 : i32
    %15 = arith.index_cast %0 : i32 to index
    %c0 = arith.constant 0 : index
    %c0_7 = arith.constant 0 : index
    %16 = vector.load %arg6[%15, %c0, %c0_7] : memref<2x8x128xf32, #tpu.memory_space<vmem>>, vector<1x8x128xf32>
    %17 = vector.shape_cast %16 : vector<1x8x128xf32> to vector<8x128xf32>
    %18 = arith.index_cast %14 : i32 to index
    %c0_8 = arith.constant 0 : index
    %19 = vector.load %arg3[%18, %c0_8] : memref<8x128xf32, #tpu.memory_space<vmem>>, vector<8x128xf32>
    %20 = arith.addf %17, %19 : vector<8x128xf32>
    %c0_9 = arith.constant 0 : index
    %c0_10 = arith.constant 0 : index
    %c0_11 = arith.constant 0 : index
    %21 = vector.load %arg5[%c0_9, %c0_10, %c0_11] : memref<1x8x128xf32, #tpu.memory_space<vmem>>, vector<1x8x128xf32>
    %22 = vector.shape_cast %21 : vector<1x8x128xf32> to vector<8x128xf32>
    %23 = vector.shape_cast %20 : vector<8x128xf32> to vector<1x8x128xf32>
    tpu.vector_store %arg5[%c0_9, %c0_10, %c0_11], %23 {strides = array<i32>} : memref<1x8x128xf32, #tpu.memory_space<vmem>>, vector<1x8x128xf32>,
    return
  }
  func.func @transform_0(%arg0: i32, %arg1: i32, %arg2: memref<2x8xi32, #tpu.memory_space<smem>>) -> (i32, i32) {
    %c0_i32 = arith.constant 0 : i32
    %c0_i32_0 = arith.constant 0 : i32
    %c0_i32_1 = arith.constant 0 : i32
    return %c0_i32, %c0_i32_0 : i32, i32
  }
  func.func @transform_2(%arg0: i32, %arg1: i32, %arg2: memref<2x8xi32, #tpu.memory_space<smem>>) -> (i32, i32, i32) {
    %c0_i32 = arith.constant 0 : i32
    %c0_i32_0 = arith.constant 0 : i32
    return %arg0, %arg1, %c0_i32 : i32, i32, i32
  }
}

</mosaic_0001>

<bundles_post_ra>
// kernel: tpu_custom_call.1
= control target key start
LH: loop header
LB: loop body
LE: loop exit
PB: predicated region body
PF: predicated region fallthrough
CT: control target
= control target key end

     0   :  { %s1398_s0 = inlined_call_operand.hbm [shape: s32[2,8], index: 0, kind: input, shape index: {}]   ;;  %s1399_s1 = inlined_call_operand.hbm [shape: f32[8,128], index: 1, kind: input, shape index: {}]   ;;  %s1400_s2 = inlined_call_operand.hbm [shape: f32[128,128], index: 2, kind: input, shape index: {}]   ;;  %s1401_s3 = inlined_call_operand.hbm [shape: f32[2,8,128], index: 3, kind: output, shape index: {}]  }
   0x1   :  { %1408 = sst [smem:[#allocation49_spill]] %s1399_s1  ;;  %s758_s14 = scalar_lea.hbm %s1398_s0, 32 }
   0x2   :  { %p759_p0 = scmp.ne.s32.totalorder %s1398_s0, %s758_s14  ;;  %p762_p1 = scmp.lt.u32.totalorder %s758_s14, %s1398_s0 }
   0x4   :  { %p764_p2 = pnand %p762_p1, %p759_p0 }
   0x6   :  { %767 = shalt.err (!%p764_p2)  }
   0x7   :  { %s1076_s19 = smov [#allocation5]  }
   0x8   :  { %9 = dma.hbm_to_smem %s1398_s0, 32, %s1076_s19, [#allocation4] }
   0x9   :  { %1040 = dma.done.wait [#allocation4], 32 }
   0xa   :  { %1041 = vsyncadd [#allocation4], 4294967264 }
   0xb   :  { %11 = sfence }
   0xc   :  { %12 = vsyncpa [#allocation7], 0 }
   0xd   :  { %13 = vsyncpa [#allocation8], 0 }
   0xe   :  { %15 = vsyncpa [#allocation8 + $0x1], 0  ;;  %s1119_s22 = smov 0   ;;  %s1121_s23 = smov 0  }
   0xf   :  { %s1123_s24 = smov 0   ;;  %s1125_s25 = smov 0  }
  0x10   :  { %s1127_s26 = smov 0   ;;  %s1129_s27 = smov 0  }
  0x11 LB: > { %s638_s0 = sadd.s32 4294967295, %s1074_s27   ;;  %s639_s28 = sadd.s32 4294967294, %s1074_s27   ;;  %s1074_s27 = sphi %s1129_s27, %s21_s27   ;;  %s1070_s26 = sphi %s1127_s26, %s1426_s26   ;;  %s1066_s25 = sphi %s1125_s25, %s1425_s25   ;;  %s1062_s24 = sphi %s1123_s24, %s1424_s24   ;;  %s1058_s23 = sphi %s1121_s23, %s1423_s23   ;;  %s1054_s22 = sphi %s1119_s22, %s1422_s22  }
  0x12   : > { %s33_s29 = sadd.s32 1, %s1070_s26  ;;  %s63_s30 = sadd.s32 1, %s1062_s24 }
  0x13   : > { %p35_p3 = scmp.ge.s32.totalorder %s33_s29, 2  ;;  %p73_p4 = scmp.ne.s32.totalorder %s1062_s24, %s1058_s23 }
  0x14   : > { %p74_p5 = scmp.eq.s32.totalorder %s638_s0, 1  ;;  %p79_p6 = scmp.ne.s32.totalorder %s1058_s23, %s1054_s22 }
  0x15   : > { %s1428_s29 = smov (%p35_p3, %s33_s29), 0  ;;  %p80_p8 = scmp.eq.s32.totalorder %s639_s28, 1 }
  0x16   : > { %1409 = sst [smem:[#allocation48_spill]] %s1428_s29  ;;  %p1159_p7 = por %p74_p5, %p73_p4 }
  0x17   : > { %s58_s5 = ssub.s32 %s1070_s26, %s1428_s29  ;;  %p640_p9 = scmp.ge.s32.totalorder %s1074_s27, 1 }
  0x18   : > { %s1410_s4 = scalar_select %p1159_p7, 1, 0 }
  0x19   : > { %p61_p10 = scmp.eq.s32.totalorder %s58_s5, 0  ;;  %p1166_p11 = por %p80_p8, %p79_p6 }
  0x1a   : > { %p87_p12 = scmp.lt.s32.totalorder %s1074_s27, 3  ;;  %p1178_p0 = scmp.eq.s32.totalorder %s638_s0, 0 }
  0x1b   : > { %s1411_s6 = scalar_select %p1166_p11, 1, 0 }
  0x1c   : > { %s1172_s7 = scalar_select %p61_p10, %s1062_s24, %s63_s30  }
  0x1d   : > { %p1174_p13 = pnand %p640_p9, %p87_p12  ;;  %s1077_s10 = smov [#allocation6]  }
  0x1e   : > { %s1413_s9 = scalar_select %p1178_p0, 1, 0 }
  0x1f   : > { %s1412_s8 = scalar_select %p1174_p13, 1, 0 }
  0x20   : > { %p689_p1 = pneg %p1174_p13  ;;  %s100_s11 = sshll.u32 %s1077_s10, 4  ;;  %s101_s11 = int_to_ptr.vmem [resolvable:$true] %s100_s11 }
  0x21   : > { %s1415_s1 = sld [smem:[#allocation49_spill]] }
  0x22   : > { %p1186_p2 = pnand %p1178_p0, %p689_p1 }
  0x24   : > { %p770_p4 = pneg %p1186_p2 }
  0x27   : > { %s768_s15 = scalar_lea.hbm %s1415_s1, 128 }
  0x28   : > { %p769_p3 = scmp.ne.s32.totalorder %s1415_s1, %s768_s15  ;;  %p775_p8 = scmp.lt.u32.totalorder %s768_s15, %s1415_s1 }
  0x2a   : > { %p771_p5 = pnand %p770_p4, %p769_p3 }
  0x2c   : > { %p772_p6 = pneg %p771_p5 }
  0x2e   : > { %p777_p9 = pnand %p775_p8, %p772_p6 }
  0x30   : > { %780 = shalt.err (!%p777_p9)
}
  0x31   : > { %s781_s20 = scalar_lea.vmem %s101_s11, 128  ;;  %p789_p11 = scmp.lt.s32.totalorder %s101_s11, %s101_s11 }
  0x32   : > { %p782_p10 = scmp.ne.s32.totalorder %s101_s11, %s781_s20  ;;  %p790_p7 = scmp.lt.s32.totalorder %s781_s20, %s781_s20 }
  0x34   : > { %p784_p12 = pnand %p782_p10, %p770_p4  ;;  %p791_p0 = por %p790_p7, %p789_p11 }
  0x36   : > { %p785_p1 = pneg %p784_p12 }
  0x38   : > { %p792_p13 = pnand %p791_p0, %p785_p1 }
  0x3a   : > { %795 = shalt.err (!%p792_p13)
}
  0x3b   : > { %692 = dma.hbm_to_vmem [thread:$0]  (!%p1186_p2), %s1415_s1, 128, %s101_s11, [#allocation7]  }
  0x3c   : > { %p1416_p3 = scmp.ne.s32.totalorder %s1412_s8, 0 }
  0x3d   : > { %p1417_p5 = scmp.ne.s32.totalorder (!%p1416_p3), %s1413_s9, 0 }
  0x3e   : > { %113 = sbr.rel (%p1416_p3) target bundleno = 278 (0x116), region = 24 }
  0x45   : > { %1043 = dma.done.wait (%p1417_p5), [#allocation7], 128  }
  0x46   : > { %1045 = vsyncadd (%p1417_p5), [#allocation7], 4294967168  ;;  %s1406_s28 = sand.u32 1, %s1058_s23   ;;  %s1214_s30 = sshll.u32 %s1066_s25, 7 }
  0x47   : > { %s1218_s5 = sshll.u32 %s1406_s28, 3  ;;  %s139_s8 = sld [smem:[#allocation5 + %s1214_s30]] }
  0x48   : > { %s1078_s10 = smov [#allocation2]   ;;  %s153_s12 = sadd.s32 1, %s1214_s30 }
  0x49   : > { %s149_s11 = sshll.u32 %s1078_s10, 4  ;;  %s1224_s9 = sld [smem:[#allocation5 + %s153_s12]]  ;;  %s1222_s11 = int_to_ptr.vmem [resolvable:$true] %s149_s11 }
  0x4a   : > { %s169_s13 = sadd.s32 2, %s1214_s30  ;;  %s1079_s14 = smov [#allocation2 + $0x1]  }
  0x4b   : > { %s165_s15 = sshll.u32 %s1079_s14, 4  ;;  %s1227_s16 = sld [smem:[#allocation5 + %s169_s13]]  ;;  %s1229_s15 = int_to_ptr.vmem [resolvable:$true] %s165_s15 }
  0x4c   : > { %s1237_s10 = scalar_lea.hbm %s1400_s2, 2048 }
  0x4d   : > { %s646_s25 = sshll.u32 %s139_s8, 4 }
  0x4e   : > { %s141_s19 = scalar_lea.hbm %s1400_s2, %s646_s25 }
  0x4f   : > { %s796_s20 = scalar_lea.hbm %s141_s19, 16  ;;  %p799_p11 = scmp.lt.u32.totalorder %s141_s19, %s1400_s2 }
  0x50   : > { %p797_p7 = scmp.ne.s32.totalorder %s141_s19, %s796_s20  ;;  %p800_p13 = scmp.lt.u32.totalorder %s1237_s10, %s796_s20 }
  0x51   : > { %p802_p2 = scmp.lt.u32.totalorder %s796_s20, %s141_s19 }
  0x52   : > { %p801_p0 = por %p800_p13, %p799_p11 }
  0x54   : > { %p803_p4 = por %p802_p2, %p801_p0 }
  0x56   : > { %p804_p6 = pnand %p803_p4, %p797_p7 }
  0x58   : > { %807 = shalt.err (!%p804_p6)  }
  0x59   : > { %s808_s8 = scalar_lea.vmem %s1222_s11, 16  ;;  %s1246_s13 = scalar_lea.vmem %s1222_s11, 256 }
  0x5a   : > { %p809_p8 = scmp.ne.s32.totalorder %s1222_s11, %s808_s8  ;;  %p813_p9 = scmp.lt.s32.totalorder %s1222_s11, %s1222_s11 }
  0x5b   : > { %p814_p10 = scmp.lt.s32.totalorder %s1246_s13, %s808_s8 }
  0x5d   : > { %p815_p12 = por %p814_p10, %p813_p9 }
  0x5f   : > { %p816_p1 = pnand %p815_p12, %p809_p8 }
  0x61   : > { %819 = shalt.err (!%p816_p1)  }
  0x62   : > { %152 = dma.hbm_to_vmem [thread:$0]  %s141_s19, 16, %s1222_s11, [#allocation3] }
  0x63   : > { %s647_s28 = sshll.u32 %s1224_s9, 4  ;;  %s1080_s14 = smov [#allocation2 + $0x2]  }
  0x64   : > { %s181_s25 = sshll.u32 %s1080_s14, 4  ;;  %s156_s20 = scalar_lea.hbm %s1400_s2, %s647_s28  ;;  %s1256_s25 = int_to_ptr.vmem [resolvable:$true] %s181_s25 }
  0x65   : > { %s820_s21 = scalar_lea.hbm %s156_s20, 16  ;;  %p823_p5 = scmp.lt.u32.totalorder %s156_s20, %s1400_s2 }
  0x66   : > { %p821_p3 = scmp.ne.s32.totalorder %s156_s20, %s820_s21  ;;  %p824_p7 = scmp.lt.u32.totalorder %s1237_s10, %s820_s21 }
  0x67   : > { %p826_p13 = scmp.lt.u32.totalorder %s820_s21, %s156_s20 }
  0x68   : > { %p825_p11 = por %p824_p7, %p823_p5 }
  0x6a   : > { %p827_p0 = por %p826_p13, %p825_p11 }
  0x6c   : > { %p828_p2 = pnand %p827_p0, %p821_p3 }
  0x6e   : > { %831 = shalt.err (!%p828_p2)  }
  0x6f   : > { %s832_s9 = scalar_lea.vmem %s1229_s15, 16  ;;  %p837_p6 = scmp.lt.s32.totalorder %s1229_s15, %s1222_s11 }
  0x70   : > { %p833_p4 = scmp.ne.s32.totalorder %s1229_s15, %s832_s9  ;;  %p838_p8 = scmp.lt.s32.totalorder %s1246_s13, %s832_s9 }
  0x72   : > { %p839_p9 = por %p838_p8, %p837_p6 }
  0x74   : > { %p840_p10 = pnand %p839_p9, %p833_p4 }
  0x76   : > { %843 = shalt.err (!%p840_p10)  }
  0x77   : > { %168 = dma.hbm_to_vmem [thread:$0]  %s156_s20, 16, %s1229_s15, [#allocation3] }
  0x78   : > { %s648_s19 = sshll.u32 %s1227_s16, 4  ;;  %s185_s8 = sadd.s32 3, %s1214_s30 }
  0x79   : > { %s172_s17 = scalar_lea.hbm %s1400_s2, %s648_s19  ;;  %s1273_s18 = sld [smem:[#allocation5 + %s185_s8]] }
  0x7a   : > { %s844_s21 = scalar_lea.hbm %s172_s17, 16  ;;  %p847_p1 = scmp.lt.u32.totalorder %s172_s17, %s1400_s2 }
  0x7b   : > { %p845_p12 = scmp.ne.s32.totalorder %s172_s17, %s844_s21  ;;  %p848_p3 = scmp.lt.u32.totalorder %s1237_s10, %s844_s21 }
  0x7c   : > { %p850_p7 = scmp.lt.u32.totalorder %s844_s21, %s172_s17 }
  0x7d   : > { %p849_p5 = por %p848_p3, %p847_p1 }
  0x7f   : > { %p851_p11 = por %p850_p7, %p849_p5 }
  0x81   : > { %p852_p13 = pnand %p851_p11, %p845_p12 }
  0x83   : > { %855 = shalt.err (!%p852_p13)  }
  0x84   : > { %s856_s15 = scalar_lea.vmem %s1256_s25, 16  ;;  %p861_p2 = scmp.lt.s32.totalorder %s1256_s25, %s1222_s11 }
  0x85   : > { %p857_p0 = scmp.ne.s32.totalorder %s1256_s25, %s856_s15  ;;  %p862_p4 = scmp.lt.s32.totalorder %s1246_s13, %s856_s15 }
  0x87   : > { %p863_p6 = por %p862_p4, %p861_p2 }
  0x89   : > { %p864_p8 = pnand %p863_p6, %p857_p0 }
  0x8b   : > { %867 = shalt.err (!%p864_p8)  }
  0x8c   : > { %184 = dma.hbm_to_vmem [thread:$0]  %s172_s17, 16, %s1256_s25, [#allocation3] }
  0x8d   : > { %s201_s16 = sadd.s32 4, %s1214_s30  ;;  %s1081_s20 = smov [#allocation2 + $0x3]  }
  0x8e   : > { %s197_s9 = sshll.u32 %s1081_s20, 4  ;;  %s202_s19 = sld [smem:[#allocation5 + %s201_s16]]  ;;  %s198_s9 = int_to_ptr.vmem [resolvable:$true] %s197_s9 }
  0x8f   : > { %s1082_s8 = smov [#allocation2 + $0x4]   ;;  %s217_s14 = sadd.s32 5, %s1214_s30 }
  0x90   : > { %s213_s28 = sshll.u32 %s1082_s8, 4  ;;  %s649_s21 = sshll.u32 %s1273_s18, 4  ;;  %s1288_s28 = int_to_ptr.vmem [resolvable:$true] %s213_s28 }
  0x91   : > { %s188_s15 = scalar_lea.hbm %s1400_s2, %s649_s21  ;;  %s1293_s1 = sld [smem:[#allocation5 + %s217_s14]] }
  0x92   : > { %s868_s29 = scalar_lea.hbm %s188_s15, 16  ;;  %p871_p10 = scmp.lt.u32.totalorder %s188_s15, %s1400_s2 }
  0x93   : > { %p869_p9 = scmp.ne.s32.totalorder %s188_s15, %s868_s29  ;;  %p872_p12 = scmp.lt.u32.totalorder %s1237_s10, %s868_s29 }
  0x94   : > { %p874_p3 = scmp.lt.u32.totalorder %s868_s29, %s188_s15 }
  0x95   : > { %p873_p1 = por %p872_p12, %p871_p10 }
  0x97   : > { %p875_p5 = por %p874_p3, %p873_p1 }
  0x99   : > { %p876_p7 = pnand %p875_p5, %p869_p9 }
  0x9b   : > { %879 = shalt.err (!%p876_p7)  }
  0x9c   : > { %s880_s18 = scalar_lea.vmem %s198_s9, 16  ;;  %p885_p13 = scmp.lt.s32.totalorder %s198_s9, %s1222_s11 }
  0x9d   : > { %p881_p11 = scmp.ne.s32.totalorder %s198_s9, %s880_s18  ;;  %p886_p0 = scmp.lt.s32.totalorder %s1246_s13, %s880_s18 }
  0x9f   : > { %p887_p2 = por %p886_p0, %p885_p13 }
  0xa1   : > { %p888_p4 = pnand %p887_p2, %p881_p11 }
  0xa3   : > { %891 = shalt.err (!%p888_p4)  }
  0xa4   : > { %200 = dma.hbm_to_vmem [thread:$0]  %s188_s15, 16, %s198_s9, [#allocation3] }
  0xa5   : > { %s650_s16 = sshll.u32 %s202_s19, 4  ;;  %s1083_s29 = smov [#allocation2 + $0x5]  }
  0xa6   : > { %s204_s14 = scalar_lea.hbm %s1400_s2, %s650_s16  ;;  %s229_s21 = sshll.u32 %s1083_s29, 4  ;;  %s230_s21 = int_to_ptr.vmem [resolvable:$true] %s229_s21 }
  0xa7   : > { %s892_s0 = scalar_lea.hbm %s204_s14, 16  ;;  %p895_p8 = scmp.lt.u32.totalorder %s204_s14, %s1400_s2 }
  0xa8   : > { %p893_p6 = scmp.ne.s32.totalorder %s204_s14, %s892_s0  ;;  %p896_p9 = scmp.lt.u32.totalorder %s1237_s10, %s892_s0 }
  0xa9   : > { %p898_p12 = scmp.lt.u32.totalorder %s892_s0, %s204_s14 }
  0xaa   : > { %p897_p10 = por %p896_p9, %p895_p8 }
  0xac   : > { %p899_p1 = por %p898_p12, %p897_p10 }
  0xae   : > { %p900_p3 = pnand %p899_p1, %p893_p6 }
  0xb0   : > { %903 = shalt.err (!%p900_p3)  }
  0xb1   : > { %s904_s9 = scalar_lea.vmem %s1288_s28, 16  ;;  %p909_p7 = scmp.lt.s32.totalorder %s1288_s28, %s1222_s11 }
  0xb2   : > { %p905_p5 = scmp.ne.s32.totalorder %s1288_s28, %s904_s9  ;;  %p910_p11 = scmp.lt.s32.totalorder %s1246_s13, %s904_s9 }
  0xb4   : > { %p911_p13 = por %p910_p11, %p909_p7 }
  0xb6   : > { %p912_p0 = pnand %p911_p13, %p905_p5 }
  0xb8   : > { %915 = shalt.err (!%p912_p0)  }
  0xb9   : > { %216 = dma.hbm_to_vmem [thread:$0]  %s204_s14, 16, %s1288_s28, [#allocation3] }
  0xba   : > { %s233_s19 = sadd.s32 6, %s1214_s30  ;;  %s651_s15 = sshll.u32 %s1293_s1, 4 }
  0xbb   : > { %s234_s17 = sld [smem:[#allocation5 + %s233_s19]]  ;;  %s220_s20 = scalar_lea.hbm %s1400_s2, %s651_s15 }
  0xbc   : > { %s916_s8 = scalar_lea.hbm %s220_s20, 16  ;;  %p919_p4 = scmp.lt.u32.totalorder %s220_s20, %s1400_s2 }
  0xbd   : > { %p917_p2 = scmp.ne.s32.totalorder %s220_s20, %s916_s8  ;;  %p920_p6 = scmp.lt.u32.totalorder %s1237_s10, %s916_s8 }
  0xbe   : > { %p922_p9 = scmp.lt.u32.totalorder %s916_s8, %s220_s20 }
  0xbf   : > { %p921_p8 = por %p920_p6, %p919_p4 }
  0xc1   : > { %p923_p10 = por %p922_p9, %p921_p8 }
  0xc3   : > { %p924_p12 = pnand %p923_p10, %p917_p2 }
  0xc5   : > { %927 = shalt.err (!%p924_p12)  }
  0xc6   : > { %s928_s28 = scalar_lea.vmem %s230_s21, 16  ;;  %p933_p3 = scmp.lt.s32.totalorder %s230_s21, %s1222_s11 }
  0xc7   : > { %p929_p1 = scmp.ne.s32.totalorder %s230_s21, %s928_s28  ;;  %p934_p5 = scmp.lt.s32.totalorder %s1246_s13, %s928_s28 }
  0xc9   : > { %p935_p7 = por %p934_p5, %p933_p3 }
  0xcb   : > { %p936_p11 = pnand %p935_p7, %p929_p1 }
  0xcd   : > { %939 = shalt.err (!%p936_p11)  }
  0xce   : > { %232 = dma.hbm_to_vmem [thread:$0]  %s220_s20, 16, %s230_s21, [#allocation3] }
  0xcf   : > { %s1084_s1 = smov [#allocation2 + $0x6]   ;;  %s249_s12 = sadd.s32 7, %s1214_s30 }
  0xd0   : > { %s245_s14 = sshll.u32 %s1084_s1, 4  ;;  %s250_s25 = sld [smem:[#allocation5 + %s249_s12]]  ;;  %s246_s14 = int_to_ptr.vmem [resolvable:$true] %s245_s14 }
  0xd1   : > { %s652_s9 = sshll.u32 %s234_s17, 4  ;;  %s1085_s19 = smov [#allocation2 + $0x7]  }
  0xd2   : > { %s261_s15 = sshll.u32 %s1085_s19, 4  ;;  %s236_s8 = scalar_lea.hbm %s1400_s2, %s652_s9  ;;  %s262_s15 = int_to_ptr.vmem [resolvable:$true] %s261_s15 }
  0xd3   : > { %s940_s29 = scalar_lea.hbm %s236_s8, 16  ;;  %p943_p0 = scmp.lt.u32.totalorder %s236_s8, %s1400_s2 }
  0xd4   : > { %p941_p13 = scmp.ne.s32.totalorder %s236_s8, %s940_s29  ;;  %p944_p2 = scmp.lt.u32.totalorder %s1237_s10, %s940_s29 }
  0xd5   : > { %p946_p6 = scmp.lt.u32.totalorder %s940_s29, %s236_s8 }
  0xd6   : > { %p945_p4 = por %p944_p2, %p943_p0 }
  0xd8   : > { %p947_p8 = por %p946_p6, %p945_p4 }
  0xda   : > { %p948_p9 = pnand %p947_p8, %p941_p13 }
  0xdc   : > { %951 = shalt.err (!%p948_p9)  }
  0xdd   : > { %s952_s21 = scalar_lea.vmem %s246_s14, 16  ;;  %p957_p12 = scmp.lt.s32.totalorder %s246_s14, %s1222_s11 }
  0xde   : > { %p953_p10 = scmp.ne.s32.totalorder %s246_s14, %s952_s21  ;;  %p958_p1 = scmp.lt.s32.totalorder %s1246_s13, %s952_s21 }
  0xe0   : > { %p959_p3 = por %p958_p1, %p957_p12 }
  0xe2   : > { %p960_p5 = pnand %p959_p3, %p953_p10 }
  0xe4   : > { %963 = shalt.err (!%p960_p5)  }
  0xe5   : > { %248 = dma.hbm_to_vmem [thread:$0]  %s236_s8, 16, %s246_s14, [#allocation3] }
  0xe6   : > { %s653_s17 = sshll.u32 %s250_s25, 4 }
  0xe7   : > { %s252_s12 = scalar_lea.hbm %s1400_s2, %s653_s17 }
  0xe8   : > { %s964_s9 = scalar_lea.hbm %s252_s12, 16  ;;  %p967_p11 = scmp.lt.u32.totalorder %s252_s12, %s1400_s2 }
  0xe9   : > { %p965_p7 = scmp.ne.s32.totalorder %s252_s12, %s964_s9  ;;  %p968_p13 = scmp.lt.u32.totalorder %s1237_s10, %s964_s9 }
  0xea   : > { %p970_p2 = scmp.lt.u32.totalorder %s964_s9, %s252_s12 }
  0xeb   : > { %p969_p0 = por %p968_p13, %p967_p11 }
  0xed   : > { %p971_p4 = por %p970_p2, %p969_p0 }
  0xef   : > { %p972_p6 = pnand %p971_p4, %p965_p7 }
  0xf1   : > { %975 = shalt.err (!%p972_p6)  }
  0xf2   : > { %s976_s14 = scalar_lea.vmem %s262_s15, 16  ;;  %p981_p9 = scmp.lt.s32.totalorder %s262_s15, %s1222_s11 }
  0xf3   : > { %p977_p8 = scmp.ne.s32.totalorder %s262_s15, %s976_s14  ;;  %p982_p10 = scmp.lt.s32.totalorder %s1246_s13, %s976_s14 }
  0xf5   : > { %p983_p12 = por %p982_p10, %p981_p9 }
  0xf7   : > { %p984_p1 = pnand %p983_p12, %p977_p8 }
  0xf9   : > { %987 = shalt.err (!%p984_p1)  }
  0xfa   : > { %264 = dma.hbm_to_vmem [thread:$0]  %s252_s12, 16, %s262_s15, [#allocation3] }
  0xfb   : > { %s127_s25 = scalar_lea.vmem [#allocation9], %s1218_s5 }
  0xfc   : > { %1046 = dma.done.wait [#allocation3], 128 }
  0xfd   : > { %1047 = vsyncadd [#allocation3], 4294967168  ;;  %s496_s10 = sshll.u32 %s127_s25, 4  ;;  %v476_v0 = vld [vmem:[#allocation2] sm:$0xff]  ;;  %v478_v1 = vld [vmem:[#allocation6] sm:$0xff]  ;;  %s1349_s11 = scalar_lea.hbm %s1401_s3, %s1214_s30  ;;  %s1351_s10 = int_to_ptr.vmem [resolvable:$true] %s496_s10 }
  0xfe   : > { %v479_v2 = vadd.f32 %v478_v1, %v476_v0  ;;  %s1418_s5 = sand.u32 1, %s1058_s23   ;;  %s988_s15 = scalar_lea.vmem %s1351_s10, 128 }
  0xff   : > { %s482_s13 = scalar_lea.sflag [#allocation8], %s1418_s5  ;;  %p989_p3 = scmp.ne.s32.totalorder %s1351_s10, %s988_s15 }
 0x100   : > { %480 = vst [vmem:[%s127_s25] sm:$0xff] %v479_v2  ;;  %p1419_p5 = scmp.ne.s32.totalorder %s1410_s4, 0  ;;  %s1086_s29 = smov [#allocation9]  }
 0x101   : > { %s992_s0 = sshll.u32 %s1086_s29, 4  ;;  %s993_s0 = int_to_ptr.vmem [resolvable:$false] %s992_s0 }
 0x102   : > { %p990_p7 = pnand %p989_p3, %p1419_p5  ;;  %s994_s28 = scalar_lea.vmem %s993_s0, 256 }
 0x103   : > { %p995_p13 = scmp.lt.s32.totalorder %s1351_s10, %s993_s0  ;;  %p996_p0 = scmp.lt.s32.totalorder %s994_s28, %s988_s15 }
 0x104   : > { %p991_p11 = pneg %p990_p7 }
 0x105   : > { %p997_p2 = por %p996_p0, %p995_p13 }
 0x107   : > { %p998_p4 = pnand %p997_p2, %p991_p11 }
 0x109   : > { %1001 = shalt.err (!%p998_p4)
}
 0x10a   : > { %s1002_s30 = scalar_lea.hbm %s1349_s11, 128  ;;  %s1006_s20 = scalar_lea.hbm %s1401_s3, 256 }
 0x10b   : > { %p1003_p6 = scmp.ne.s32.totalorder %s1349_s11, %s1002_s30  ;;  %p1007_p10 = scmp.lt.u32.totalorder %s1349_s11, %s1401_s3 }
 0x10c   : > { %p1008_p12 = scmp.lt.u32.totalorder %s1006_s20, %s1002_s30  ;;  %p1010_p3 = scmp.lt.u32.totalorder %s1002_s30, %s1349_s11 }
 0x10d   : > { %p1004_p8 = pnand %p1003_p6, %p1419_p5 }
 0x10e   : > { %p1009_p1 = por %p1008_p12, %p1007_p10 }
 0x10f   : > { %p1005_p9 = pneg %p1004_p8 }
 0x110   : > { %p1011_p7 = por %p1010_p3, %p1009_p1 }
 0x112   : > { %p1012_p11 = pnand %p1011_p7, %p1005_p9 }
 0x114   : > { %1015 = shalt.err (!%p1012_p11)
}
 0x115   : > { %687 = dma.vmem_to_hbm [thread:$0]  (%p1419_p5), %s1351_s10, 128, %s1349_s11, %s482_s13  }
 0x116 PF: > { %p699_p13 = scmp.ge.s32.totalorder %s1074_s27, 2  ;;  %s508_s9 = sand.u32 1, %s1054_s22  }
 0x117   : > { %p1420_p0 = scmp.ne.s32.totalorder %s1411_s6, 0  ;;  %s509_s19 = scalar_lea.sflag [#allocation8], %s508_s9 }
 0x119   : > { %p694_p2 = pnand %p699_p13, %p1420_p0 }
 0x11b   : > { %1049 = dma.done.wait (!%p694_p2), %s509_s19, 128  }
 0x11c   : > { %1051 = vsyncadd (!%p694_p2), %s509_s19, 4294967168  ;;  %s21_s27 = sadd.s32 1, %s1074_s27   ;;  %s1421_s4 = sld [smem:[#allocation48_spill]] }
 0x11d   : > { %p18_p4 = scmp.ge.s32.totalorder %s21_s27, 4   ;;  %s1422_s22 = smov %s1058_s23 }
 0x11e   : > { %s1423_s23 = smov %s1062_s24  ;;  %s1424_s24 = smov %s1172_s7 }
 0x11f   : > { %s1425_s25 = smov %s1070_s26  ;;  %20 = sbr.rel (!%p18_p4) target bundleno = 17 (0x11), region = 169 }
 0x122   : > { %s1426_s26 = smov %s1421_s4 }
 0x126   :  { %514 = vsyncpa [#allocation7], 1 }
 0x127   :  { %516 = vsyncpa [#allocation7 + $0x1], 1 }
 0x128   :  { %517 = vsyncpa [#allocation8], 1 }
 0x129   :  { %519 = vsyncpa [#allocation8 + $0x1], 1 }
 0x12a   :  { %520 = vsyncmov [#allocation3] }
 0x12d   :  { %s521_s6 = vpop.sfrf %520 }
 0x12e   :  { %p681_p5 = scmp.ne.s32.totalorder %s521_s6, 0 }
 0x130   :  { %525 = shalt.err (%p681_p5)  }
 0x131   :  { %527 = vsyncmov [#allocation3 + $0x1] }
 0x134   :  { %s528_s18 = vpop.sfrf %527 }
 0x135   :  { %p682_p6 = scmp.ne.s32.totalorder %s528_s18, 0 }
 0x137   :  { %532 = shalt.err (%p682_p6)  }

</bundles_post_ra>
